<compile_context>
chip_gen: v7x
topology: tpu7x:2x2x1
jax: 0.10.0
libtpu: 0.0.40
codegen_flags: <defaults>
</compile_context>

<pallas_src>
import jax
import jax.numpy as jnp
from jax import lax
from jax.experimental import pallas as pl
from jax.experimental.pallas import tpu as pltpu


def _round_up(x, m):
    return ((x + m - 1) // m) * m


# ---------------------------------------------------------------------------
# Kernel 1: h = z @ W_t + b   (W_t laid out as [indim_pad, d_pad]; h in bf16)
# ---------------------------------------------------------------------------
def _linear_kernel(z_ref, wt_ref, b_ref, h_ref, acc_ref):
    @pl.when(pl.program_id(2) == 0)
    def _():
        acc_ref[...] = jnp.zeros_like(acc_ref)

    acc_ref[...] += jnp.dot(z_ref[...], wt_ref[...],
                            preferred_element_type=jnp.float32)

    @pl.when(pl.program_id(2) == pl.num_programs(2) - 1)
    def _():
        # TODO(synk): training-mode dropout would use pltpu.prng_seed /
        # pltpu.prng_random_bits; eval mode (training=False) is the identity.
        h_ref[...] = (acc_ref[...] + b_ref[...]).astype(h_ref.dtype)


def _linear(z, wt, b, *, tm, tn, tk, h_dtype):
    n, k_pad = z.shape
    d_pad = wt.shape[1]
    grid = (pl.cdiv(n, tm), pl.cdiv(d_pad, tn), pl.cdiv(k_pad, tk))
    h_bytes = jnp.dtype(h_dtype).itemsize
    return pl.pallas_call(
        _linear_kernel,
        out_shape=jax.ShapeDtypeStruct((n, d_pad), h_dtype),
        grid=grid,
        in_specs=[
            pl.BlockSpec((tm, tk), lambda i, j, k: (i, k)),
            pl.BlockSpec((tk, tn), lambda i, j, k: (k, j)),
            pl.BlockSpec((1, tn), lambda i, j, k: (0, j)),
        ],
        out_specs=pl.BlockSpec((tm, tn), lambda i, j, k: (i, j)),
        scratch_shapes=[pltpu.VMEM((tm, tn), jnp.float32)],
        compiler_params=pltpu.CompilerParams(
            dimension_semantics=("parallel", "parallel", "arbitrary"),
        ),
        cost_estimate=pl.CostEstimate(
            flops=2 * n * k_pad * d_pad,
            transcendentals=0,
            bytes_accessed=4 * n * k_pad + 4 * k_pad * d_pad
                           + h_bytes * n * d_pad,
        ),
    )(z, wt, b)


# ---------------------------------------------------------------------------
# Kernel 2: out[i, j] = sigmoid(h_i . h_j)   (2D output-tiled, lane-dense)
# ---------------------------------------------------------------------------
def _decode_kernel(hr_ref, hc_ref, o_ref):
    # hr: (TM, D) bf16, hc: (TN, D) bf16 -> contract dim 1 of both (NT form,
    # no .T in the kernel; if the MLIR ever shows a materialized vxpose of hc
    # the linear could additionally emit h^T as a standard (K, N) rhs, but the
    # decode is HBM-writeback bound so this is not on the critical path).
    logits = lax.dot_general(
        hr_ref[...],
        hc_ref[...],
        dimension_numbers=(((1,), (1,)), ((), ())),
        preferred_element_type=jnp.float32,
    )
    # sigmoid(x) = 0.5 * (1 + tanh(x/2)): single EUP transcendental; the
    # mul/adds ride the 4-wide VALU slots which have slack under the
    # HBM-bound output writeback.
    o_ref[...] = (0.5 * jnp.tanh(0.5 * logits) + 0.5).astype(o_ref.dtype)


def _decode(h, *, tm, tn):
    n, d_pad = h.shape
    gi, gj = pl.cdiv(n, tm), pl.cdiv(n, tn)
    h_bytes = jnp.dtype(h.dtype).itemsize
    # hr is held across the inner j loop -> fetched once per row band;
    # hc is re-fetched every grid step; the f32 output is written once.
    bytes_accessed = h_bytes * (n * d_pad + gi * n * d_pad) + 4 * n * n
    return pl.pallas_call(
        _decode_kernel,
        out_shape=jax.ShapeDtypeStruct((n, n), jnp.float32),
        grid=(gi, gj),
        in_specs=[
            pl.BlockSpec((tm, d_pad), lambda i, j: (i, 0)),
            pl.BlockSpec((tn, d_pad), lambda i, j: (j, 0)),
        ],
        out_specs=pl.BlockSpec((tm, tn), lambda i, j: (i, j)),
        compiler_params=pltpu.CompilerParams(
            # NOTE(v7x): if a profile shows one TensorCore idle, switch the
            # leading axis to pltpu.CORE_PARALLEL.
            dimension_semantics=("parallel", "parallel"),
        ),
        cost_estimate=pl.CostEstimate(
            flops=2 * n * n * d_pad,
            transcendentals=n * n,
            bytes_accessed=bytes_accessed,
        ),
    )(h, h)


def _choose_decode_tiles(n, d_pad):
    """TM >= TN; TM % 8 == 0 and TN % 128 == 0 unless clamped to the full dim n.

    Budget keeps double-buffered tiles (f32 out + bf16 hr/hc blocks) inside the
    smallest default scoped VMEM across chips (16 MiB on v5e), with headroom.
    """
    budget = 12 * 1024 * 1024
    tm, tn = 128, 128
    for cand_tm, cand_tn in ((1024, 512), (512, 512), (512, 256),
                             (256, 256), (128, 128)):
        if 2 * (cand_tm * cand_tn * 4 + (cand_tm + cand_tn) * d_pad * 2) <= budget:
            tm, tn = cand_tm, cand_tn
            break
    # Clamp to the full dim for small N (block dim == array dim is always
    # legal, and avoids padding / keeps a single grid step on that axis).
    tm = n if n <= tm else tm
    tn = n if n <= tn else tn
    return tm, tn


@jax.jit
def inner_product_decoder(z, weight, bias):
    """z: [N, indim] f32, weight: [outdim, indim] (PyTorch layout), bias: [outdim] -> [N, N] f32."""
    n, indim = z.shape
    outdim = weight.shape[0]

    z = z.astype(jnp.float32)

    # K (indim): single step if modest, else 512-wide K tiles with zero padding
    # (zero K-columns contribute nothing to the accumulation).
    if indim <= 1024:
        tk, k_pad = indim, indim
    else:
        tk = 512
        k_pad = _round_up(indim, tk)

    # Decode-contraction width padded to lane width; zero columns of h cannot
    # change h @ h.T.  Column tile of the linear is a divisor of d_pad <= 512.
    d_pad = _round_up(outdim, 128)
    tn_l = d_pad
    if tn_l > 512:
        for cand in (512, 384, 256, 128):
            if d_pad % cand == 0:
                tn_l = cand
                break

    tm_l = n if n <= 512 else 512

    # Wrapper-side layout plumbing (done once): pre-transpose + zero-pad the
    # weight/bias; pad z along K only when K is tiled.
    wt = jnp.zeros((k_pad, d_pad), jnp.float32).at[:indim, :outdim].set(
        weight.astype(jnp.float32).T)
    b = jnp.zeros((1, d_pad), jnp.float32).at[0, :outdim].set(
        bias.astype(jnp.float32))
    if k_pad != indim:
        z = jnp.zeros((n, k_pad), jnp.float32).at[:, :indim].set(z)

    # h computed once, emitted in bf16 (halves decode HBM traffic, native bf16
    # MXU rate); the decode still accumulates the inner products in f32.
    h = _linear(z, wt, b, tm=tm_l, tn=tn_l, tk=tk, h_dtype=jnp.bfloat16)

    tm, tn = _choose_decode_tiles(n, d_pad)
    return _decode(h, tm=tm, tn=tn)


def _reference(z, weight, bias):
    h = z @ weight.T + bias
    return jax.nn.sigmoid(h @ h.T)


if __name__ == "__main__":
    key = jax.random.PRNGKey(0)
    k_z, k_w, k_b = jax.random.split(key, 3)

    N, INDIM, OUTDIM = 8, 32, 16

    z = jax.random.normal(k_z, (N, INDIM), dtype=jnp.float32)
    # Deterministic "Kaiming-uniform-ish" init for the linear layer.
    bound = 1.0 / (INDIM ** 0.5)
    weight = jax.random.uniform(k_w, (OUTDIM, INDIM), jnp.float32, -bound, bound)
    bias = jax.random.uniform(k_b, (OUTDIM,), jnp.float32, -bound, bound)

    out = inner_product_decoder(z, weight, bias)
    out = jax.block_until_ready(out)

    ref = _reference(z, weight, bias)
    assert out.shape == (N, N)
    # Tolerance covers the bf16 h rounding (inner-product error scales with
    # outdim; the tanh-form sigmoid itself is exact).
    assert jnp.allclose(out, ref, atol=5e-3, rtol=5e-3), "mismatch vs reference"

    print("KERNEL_OK")
</pallas_src>

<mosaic_0001>
module attributes {stable_mosaic.version = 11 : i64} {
  func.func @_linear_kernel(%arg0: i32, %arg1: i32, %arg2: i32, %arg3: memref<8x32xf32, #tpu.memory_space<vmem>>, %arg4: memref<32x128xf32, #tpu.memory_space<vmem>>, %arg5: memref<1x128xf32, #tpu.memory_space<vmem>>, %arg6: memref<8x128xbf16, #tpu.memory_space<vmem>>, %arg7: memref<8x128xf32, #tpu.memory_space<vmem>>) attributes {dimension_semantics = [#tpu.dimension_semantics<parallel>, #tpu.dimension_semantics<parallel>, #tpu.dimension_semantics<arbitrary>], iteration_bounds = array<i64: 1, 1, 1>, scalar_prefetch = 0 : i64, scratch_operands = 1 : i64, tpu.core_type = #tpu.core_type<tc>, window_params = [{transform_indices = @transform_0, window_bounds = array<i64: 8, 32>}, {transform_indices = @transform_1, window_bounds = array<i64: 32, 128>}, {transform_indices = @transform_2, window_bounds = array<i64: 1, 128>}, {transform_indices = @transform_3, window_bounds = array<i64: 8, 128>}]} {
    %c0_i32 = arith.constant 0 : i32
    %0 = arith.cmpi eq, %arg2, %c0_i32 : i32
    %1 = arith.extui %0 : i1 to i32
    %c0_i32_0 = arith.constant 0 : i32
    %2 = arith.cmpi ne, %1, %c0_i32_0 : i32
    scf.if %2 {
      %cst_10 = arith.constant 0.000000e+00 : f32
      %12 = vector.broadcast %cst_10 : f32 to vector<8x128xf32>
      %c0_11 = arith.constant 0 : index
      %c0_12 = arith.constant 0 : index
      %13 = vector.load %arg7[%c0_11, %c0_12] : memref<8x128xf32, #tpu.memory_space<vmem>>, vector<8x128xf32>
      tpu.vector_store %arg7[%c0_11, %c0_12], %12 {strides = array<i32>} : memref<8x128xf32, #tpu.memory_space<vmem>>, vector<8x128xf32>,
    } else {
    }
    %c0 = arith.constant 0 : index
    %c0_1 = arith.constant 0 : index
    %3 = vector.load %arg7[%c0, %c0_1] : memref<8x128xf32, #tpu.memory_space<vmem>>, vector<8x128xf32>
    %c0_2 = arith.constant 0 : index
    %c0_3 = arith.constant 0 : index
    %4 = vector.load %arg3[%c0_2, %c0_3] : memref<8x32xf32, #tpu.memory_space<vmem>>, vector<8x32xf32>
    %c0_4 = arith.constant 0 : index
    %c0_5 = arith.constant 0 : index
    %5 = vector.load %arg4[%c0_4, %c0_5] : memref<32x128xf32, #tpu.memory_space<vmem>>, vector<32x128xf32>
    %cst = arith.constant dense<0.000000e+00> : vector<8x128xf32>
    %6 = tpu.matmul %4, %5, %cst {dimension_numbers = #tpu.dot_dimension_numbers<[1], [0], [0], [1], [0, 0, 1, 1], [], []>} : vector<8x32xf32>, vector<32x128xf32>, vector<8x128xf32> -> vector<8x128xf32>
    %7 = arith.addf %3, %6 : vector<8x128xf32>
    %c0_6 = arith.constant 0 : index
    %c0_7 = arith.constant 0 : index
    %8 = vector.load %arg7[%c0_6, %c0_7] : memref<8x128xf32, #tpu.memory_space<vmem>>, vector<8x128xf32>
    tpu.vector_store %arg7[%c0_6, %c0_7], %7 {strides = array<i32>} : memref<8x128xf32, #tpu.memory_space<vmem>>, vector<8x128xf32>,
    %c0_i32_8 = arith.constant 0 : i32
    %9 = arith.cmpi eq, %arg2, %c0_i32_8 : i32
    %10 = arith.extui %9 : i1 to i32
    %c0_i32_9 = arith.constant 0 : i32
    %11 = arith.cmpi ne, %10, %c0_i32_9 : i32
    scf.if %11 {
      %c0_10 = arith.constant 0 : index
      %c0_11 = arith.constant 0 : index
      %12 = vector.load %arg7[%c0_10, %c0_11] : memref<8x128xf32, #tpu.memory_space<vmem>>, vector<8x128xf32>
      %c0_12 = arith.constant 0 : index
      %c0_13 = arith.constant 0 : index
      %13 = vector.load %arg5[%c0_12, %c0_13] : memref<1x128xf32, #tpu.memory_space<vmem>>, vector<1x128xf32>
      %14 = vector.broadcast %13 : vector<1x128xf32> to vector<8x128xf32>
      %15 = arith.addf %12, %14 : vector<8x128xf32>
      %16 = arith.truncf %15 : vector<8x128xf32> to vector<8x128xbf16>
      %c0_14 = arith.constant 0 : index
      %c0_15 = arith.constant 0 : index
      %17 = vector.load %arg6[%c0_14, %c0_15] : memref<8x128xbf16, #tpu.memory_space<vmem>>, vector<8x128xbf16>
      tpu.vector_store %arg6[%c0_14, %c0_15], %16 {strides = array<i32>} : memref<8x128xbf16, #tpu.memory_space<vmem>>, vector<8x128xbf16>,
    } else {
    }
    return
  }
  func.func @transform_0(%arg0: i32, %arg1: i32, %arg2: i32) -> (i32, i32) {
    %c0_i32 = arith.constant 0 : i32
    return %arg0, %arg2 : i32, i32
  }
  func.func @transform_1(%arg0: i32, %arg1: i32, %arg2: i32) -> (i32, i32) {
    %c0_i32 = arith.constant 0 : i32
    return %arg2, %arg1 : i32, i32
  }
  func.func @transform_2(%arg0: i32, %arg1: i32, %arg2: i32) -> (i32, i32) {
    %c0_i32 = arith.constant 0 : i32
    %c0_i32_0 = arith.constant 0 : i32
    return %c0_i32, %arg1 : i32, i32
  }
  func.func @transform_3(%arg0: i32, %arg1: i32, %arg2: i32) -> (i32, i32) {
    %c0_i32 = arith.constant 0 : i32
    return %arg0, %arg1 : i32, i32
  }
}

module attributes {stable_mosaic.version = 11 : i64} {
  func.func @_decode_kernel(%arg0: i32, %arg1: i32, %arg2: memref<8x128xbf16, #tpu.memory_space<vmem>>, %arg3: memref<8x128xbf16, #tpu.memory_space<vmem>>, %arg4: memref<8x8xf32, #tpu.memory_space<vmem>>) attributes {dimension_semantics = [#tpu.dimension_semantics<parallel>, #tpu.dimension_semantics<parallel>], iteration_bounds = array<i64: 1, 1>, scalar_prefetch = 0 : i64, scratch_operands = 0 : i64, tpu.core_type = #tpu.core_type<tc>, window_params = [{transform_indices = @transform_0, window_bounds = array<i64: 8, 128>}, {transform_indices = @transform_1, window_bounds = array<i64: 8, 128>}, {transform_indices = @transform_2, window_bounds = array<i64: 8, 8>}]} {
    %c0 = arith.constant 0 : index
    %c0_0 = arith.constant 0 : index
    %0 = vector.load %arg2[%c0, %c0_0] : memref<8x128xbf16, #tpu.memory_space<vmem>>, vector<8x128xbf16>
    %c0_1 = arith.constant 0 : index
    %c0_2 = arith.constant 0 : index
    %1 = vector.load %arg3[%c0_1, %c0_2] : memref<8x128xbf16, #tpu.memory_space<vmem>>, vector<8x128xbf16>
    %cst = arith.constant dense<0.000000e+00> : vector<8x8xf32>
    %2 = tpu.matmul %0, %1, %cst {dimension_numbers = #tpu.dot_dimension_numbers<[1], [1], [0], [0], [0, 0, 1, 0], [], []>} : vector<8x128xbf16>, vector<8x128xbf16>, vector<8x8xf32> -> vector<8x8xf32>
    %cst_3 = arith.constant 5.000000e-01 : f32
    %3 = vector.broadcast %cst_3 : f32 to vector<8x8xf32>
    %4 = arith.mulf %3, %2 : vector<8x8xf32>
    %5 = math.tanh %4 : vector<8x8xf32>
    %cst_4 = arith.constant 5.000000e-01 : f32
    %6 = vector.broadcast %cst_4 : f32 to vector<8x8xf32>
    %7 = arith.mulf %6, %5 : vector<8x8xf32>
    %cst_5 = arith.constant 5.000000e-01 : f32
    %8 = vector.broadcast %cst_5 : f32 to vector<8x8xf32>
    %9 = arith.addf %7, %8 : vector<8x8xf32>
    %c0_6 = arith.constant 0 : index
    %c0_7 = arith.constant 0 : index
    %10 = vector.load %arg4[%c0_6, %c0_7] : memref<8x8xf32, #tpu.memory_space<vmem>>, vector<8x8xf32>
    tpu.vector_store %arg4[%c0_6, %c0_7], %9 {strides = array<i32>} : memref<8x8xf32, #tpu.memory_space<vmem>>, vector<8x8xf32>,
    return
  }
  func.func @transform_0(%arg0: i32, %arg1: i32) -> (i32, i32) {
    %c0_i32 = arith.constant 0 : i32
    %c0_i32_0 = arith.constant 0 : i32
    return %arg0, %c0_i32 : i32, i32
  }
  func.func @transform_1(%arg0: i32, %arg1: i32) -> (i32, i32) {
    %c0_i32 = arith.constant 0 : i32
    %c0_i32_0 = arith.constant 0 : i32
    return %arg1, %c0_i32 : i32, i32
  }
  func.func @transform_2(%arg0: i32, %arg1: i32) -> (i32, i32) {
    %c0_i32 = arith.constant 0 : i32
    return %arg0, %arg1 : i32, i32
  }
}

</mosaic_0001>

<bundles_post_ra>
// kernel: inner_product_decoder.2
= control target key start
LH: loop header
LB: loop body
LE: loop exit
PB: predicated region body
PF: predicated region fallthrough
CT: control target
= control target key end

     0   :  { %v146_v0 = vmov 0.0|0.0   ;;  %vm147_vm0 = vmmov 0   ;;  %v148_v4 = vmov 0.0   ;;  %vm25_vm1 = vcmask 261120   ;;  %s190_s1 = inlined_call_operand.vmem [shape: f32[32,128], index: 1, kind: input, shape index: {}]   ;;  %s191_s0 = inlined_call_operand.vmem [shape: f32[8,32], index: 0, kind: input, shape index: {}]   ;;  %s192_s2 = inlined_call_operand.vmem [shape: f32[1,128], index: 2, kind: input, shape index: {}]   ;;  %s193_s3 = inlined_call_operand.vmem [shape: bf16[8,128], index: 3, kind: output, shape index: {}]  }
   0x1   :  { %137 = vmatprep.subr.bf16.mxu0 %v146_v0  ;;  %v21_v1 = vld [vmem:[%s190_s1] sm:$0xff]  ;;  %v22_v2 = vld [vmem:[%s190_s1 + $0x8] sm:$0xff]  ;;  %v23_v3 = vld [vmem:[%s190_s1 + $0x10] sm:$0xff]  ;;  %134 = vmatprep.mubr.msk.f32.mxu0 %vm147_vm0, %v148_v4 }
   0x2   :  { %v138_v5 = vpack.c.bf16 %v22_v2, %v21_v1  ;;  %v24_v6 = vld [vmem:[%s190_s1 + $0x18] sm:$0xff]  ;;  %v20_v8 = vld [vmem:[%s191_s0] sm:$0xff] }
   0x3   :  { %v141_v7 = vpack.c.bf16 %v24_v6, %v23_v3  ;;  %v120_v9 = vld [vmem:[%s192_s2] ss:$0 sm:$0xff] }
   0x4   :  { %139 = vmatpush3.bf16.msra.mxu0 %v138_v5 }
   0x5   :  { %140 = vmatprep.subr.bf16.mxu0 %v146_v0 }
   0x8   :  { %142 = vmatpush3.bf16.msra.mxu0 %v141_v7 }
   0xb   :  { %135 = vmatmul.mubr.msk.f32.vlgmr.msra.gmra.mrb[0].mxu0 %vm25_vm1, %v20_v8 }
  0xde   :  { %v95_v10 = vpop.f32.mrb[0].mxu0 }
  0xdf   :  { %v112_v11 = vadd.f32 %v120_v9, %v95_v10  ;;  %v136_v12 = vpop.f32.mrb[1].mxu0 }
  0xe1   :  { %v113_v13 = vpack.c.bf16 %v112_v11, %v112_v11 }
  0xe3   :  { %114 = vst [vmem:[%s193_s3] sm:$0xf] %v113_v13 }

// kernel: inner_product_decoder.3
= control target key start
LH: loop header
LB: loop body
LE: loop exit
PB: predicated region body
PF: predicated region fallthrough
CT: control target
= control target key end

     0   :  { %v112_v1 = vmov 0.0   ;;  %vm113_vm0 = vmmov 0   ;;  %s148_s0 = inlined_call_operand.vmem [shape: bf16[8,128], index: 0, kind: input, shape index: {}, may-alias: {0,1}]   ;;  %s149_s1 = inlined_call_operand.vmem [shape: bf16[8,128], index: 1, kind: input, shape index: {}, may-alias: {0,1}]   ;;  %s150_s2 = inlined_call_operand.hbm [shape: f32[8,8], index: 2, kind: output, shape index: {}]  }
   0x1   :  { %v14_v0 = vld [vmem:[%s149_s1] sm:$0xf]  ;;  %77 = vmatprep.subr.bf16.mxu0 %v112_v1  ;;  %79 = vmatprep.mubr.msk.bf16.mxu0 %vm113_vm0, %v112_v1 }
   0x2   :  { %7 = vsyncpa [#allocation3], 0  ;;  %78 = vmatpush3.bf16.xpose.msra.mxu0 %v14_v0  ;;  %v13_v2 = vld [vmem:[%s148_s0] sm:$0xf]  ;;  %s114_s13 = smov [#allocation2]   ;;  %vm59_vm1 = vcmask 64512  }
   0x3   :  { %s67_s1 = sshll.u32 %s114_s13, 4  ;;  %s68_s1 = int_to_ptr.vmem [resolvable:$true] %s67_s1 }
   0x4   :  { %s88_s14 = scalar_lea.vmem %s68_s1, 128  ;;  %p93_p1 = scmp.lt.s32.totalorder %s68_s1, %s68_s1 }
   0x5   :  { %p89_p0 = scmp.ne.s32.totalorder %s68_s1, %s88_s14  ;;  %p94_p2 = scmp.lt.s32.totalorder %s88_s14, %s88_s14 }
   0x7   :  { %p95_p3 = por %p94_p2, %p93_p1 }
   0x9   :  { %80 = vmatmul.mubr.bf16.vlgmr.msra.gmra.mrb[0].mxu0 %v13_v2  ;;  %p96_p4 = pnand %p95_p3, %p89_p0 }
  0xdc   :  { %v49_v3 = vpop.f32.mrb[0].mxu0 }
  0xdd   :  { %v55_v4 = vmul.f32 0.5, %v49_v3  ;;  %v81_v5 = vpop.f32.mrb[1].mxu0 }
  0xde   :  { %v52_v6 = vpop.f32.mrb[2].mxu0 }
  0xdf   :  { %86 = vtanh.f32 %v55_v4  ;;  %v82_v7 = vpop.f32.mrb[3].mxu0 }
  0xe9   :  { %v87_v8 = vpop.eup %86 }
  0xea   :  { %v57_v9 = vmul.f32 0.5, %v87_v8 }
  0xec   :  { %v58_v10 = vadd.f32 0.5, %v57_v9 }
  0xee   :  { %60 = vst.msk [vmem:[#allocation2] sm:$0xff] %vm59_vm1, %v58_v10 }
  0xef   :  { %99 = shalt.err (!%p96_p4)
}
  0xf0   :  { %s100_s16 = scalar_lea.hbm %s150_s2, 128 }
  0xf1   :  { %p101_p5 = scmp.ne.s32.totalorder %s150_s2, %s100_s16  ;;  %p104_p6 = scmp.lt.u32.totalorder %s100_s16, %s150_s2 }
  0xf3   :  { %p106_p7 = pnand %p104_p6, %p101_p5 }
  0xf5   :  { %109 = shalt.err (!%p106_p7)
}
  0xf6   :  { %70 = dma.vmem_to_hbm [thread:$0]  %s68_s1, 128, %s150_s2, [#allocation3]  }
  0xf7   :  { %110 = dma.done.wait [#allocation3], 128  }
  0xf8   :  { %111 = vsyncadd [#allocation3], 4294967168 }
  0xf9   :  { %74 = vsyncpa [#allocation3], 1 }

</bundles_post_ra>
